<compile_context>
chip_gen: v7x
topology: tpu7x:2x2x1
jax: 0.10.0
libtpu: 0.0.40
codegen_flags: <defaults>
</compile_context>

<pallas_src>
import jax
import jax.numpy as jnp
from jax.experimental import pallas as pl
from jax.experimental.pallas import tpu as pltpu

# Maze environment constants (DEFAULT_MAZE): observation is an (x, y) position,
# action space is {up, down, left, right}.
N_STATES = 2
N_ACTIONS = 4
HIDDEN = 100

# Padded, vreg-aligned sizes.
HIDDEN_PAD = 128               # lane-dense hidden width (f32 vreg lane count)
OUT_PAD = 128                  # lane-dense output slab, sliced to N_ACTIONS in wrapper
W1_ROWS = 8                    # sublane-aligned fc1 pack: rows 0..1 = w1, row 2 = b1
BIAS_ROW = N_STATES            # row of the fc1 pack holding b1 (+ the constant-1 lane)
ONE_LANE = HIDDEN_PAD - 1      # spare hidden lane (>= HIDDEN) used as constant-1 feature
PACK_ROWS = W1_ROWS + HIDDEN_PAD   # 136: single merged weight operand (one DMA)
ROW_TILE = 256                 # batch tile for the gridded (large-B) path


def net_kernel(x_ref, w_ref, out_ref):
    # x_ref:  (B_tile, N_STATES)        f32
    # w_ref:  (PACK_ROWS, HIDDEN_PAD)   f32  rows 0..7  : fc1 pack
    #                                         rows 8..135: fc2 pack (bias in last row)
    # out_ref:(B_tile, OUT_PAD)         f32  lane-dense output slab
    x = x_ref[...]

    # fc1 with K=2: two VPU broadcast-FMAs instead of an MXU matmul.
    w1_r0 = w_ref[0:1, :]                      # (1, HIDDEN_PAD)
    w1_r1 = w_ref[1:2, :]                      # (1, HIDDEN_PAD)
    b1    = w_ref[BIAS_ROW:BIAS_ROW + 1, :]    # (1, HIDDEN_PAD); lane ONE_LANE == 1.0

    h = b1 + x[:, 0:1] * w1_r0 + x[:, 1:2] * w1_r1   # (B_tile, HIDDEN_PAD)
    h = jnp.maximum(h, 0.0)                    # ReLU; constant-1 lane stays 1.0

    # fc2: one clean 128-wide MXU tile; b2 is added via the constant-1 lane row.
    w2 = w_ref[W1_ROWS:W1_ROWS + HIDDEN_PAD, :]       # (HIDDEN_PAD, OUT_PAD), static view
    out_ref[...] = jnp.dot(h, w2, preferred_element_type=jnp.float32)


def pack_params(w1, b1, w2, b2):
    """Pack PyTorch-layout params into ONE padded, bias-folded kernel operand.

    w1: (N_STATES, HIDDEN), b1: (HIDDEN,) or (1, HIDDEN)
    w2: (HIDDEN, N_ACTIONS), b2: (N_ACTIONS,) or (1, N_ACTIONS)
    Returns w_pack: (PACK_ROWS, HIDDEN_PAD) f32.
    """
    b1 = jnp.asarray(b1).reshape(-1)
    b2 = jnp.asarray(b2).reshape(-1)
    pack = jnp.zeros((PACK_ROWS, HIDDEN_PAD), jnp.float32)
    # fc1 block (rows 0..W1_ROWS-1)
    pack = pack.at[0:N_STATES, :HIDDEN].set(w1)
    pack = pack.at[BIAS_ROW, :HIDDEN].set(b1)
    pack = pack.at[BIAS_ROW, ONE_LANE].set(1.0)            # constant-1 hidden feature
    # fc2 block (rows W1_ROWS..W1_ROWS+HIDDEN_PAD-1)
    pack = pack.at[W1_ROWS:W1_ROWS + HIDDEN, :N_ACTIONS].set(w2)
    pack = pack.at[W1_ROWS + ONE_LANE, :N_ACTIONS].set(b2)  # folds b2 into the matmul
    return pack


def _pallas_forward(x_pad, w_pack):
    B_pad = x_pad.shape[0]
    if B_pad <= ROW_TILE:
        # Gridless whole-block call: a grid at this size is pure serial overhead.
        return pl.pallas_call(
            net_kernel,
            out_shape=jax.ShapeDtypeStruct((B_pad, OUT_PAD), jnp.float32),
            in_specs=[
                pl.BlockSpec((B_pad, N_STATES), lambda: (0, 0)),
                pl.BlockSpec((PACK_ROWS, HIDDEN_PAD), lambda: (0, 0)),
            ],
            out_specs=pl.BlockSpec((B_pad, OUT_PAD), lambda: (0, 0)),
        )(x_pad, w_pack)

    # Large-batch path: tile the batch dimension; "parallel" lets v7x use both TCs.
    grid = (B_pad // ROW_TILE,)
    return pl.pallas_call(
        net_kernel,
        out_shape=jax.ShapeDtypeStruct((B_pad, OUT_PAD), jnp.float32),
        grid=grid,
        in_specs=[
            pl.BlockSpec((ROW_TILE, N_STATES), lambda i: (i, 0)),
            pl.BlockSpec((PACK_ROWS, HIDDEN_PAD), lambda i: (0, 0)),
        ],
        out_specs=pl.BlockSpec((ROW_TILE, OUT_PAD), lambda i: (i, 0)),
        compiler_params=pltpu.CompilerParams(dimension_semantics=("parallel",)),
    )(x_pad, w_pack)


def net_forward(x, w_pack):
    """Q(x) = fc2(relu(fc1(x))) for any batch size B (including B=1)."""
    B = x.shape[0]
    # Keep batch a multiple of 8 (f32 sublane) so every store is unmasked.
    B_pad = max(8, ((B + 7) // 8) * 8)
    if B_pad > ROW_TILE:
        B_pad = ((B_pad + ROW_TILE - 1) // ROW_TILE) * ROW_TILE
    if B_pad != B:
        x = jnp.pad(x, ((0, B_pad - B), (0, 0)))
    out = _pallas_forward(x.astype(jnp.float32), w_pack)
    # TODO(synk): for DQN action selection, fuse the argmax (masking lanes >= N_ACTIONS
    # to -inf) into the kernel instead of re-slicing the slab in XLA here.
    return out[:B, :N_ACTIONS]


def init_params(key):
    k1, k2, k3, k4 = jax.random.split(key, 4)
    # PyTorch: weight.data.normal_(0, 0.1); biases keep default init (uniform +-1/sqrt(fan_in)).
    w1 = 0.1 * jax.random.normal(k1, (N_STATES, HIDDEN), dtype=jnp.float32)
    b1 = (1.0 / jnp.sqrt(N_STATES)) * (
        2.0 * jax.random.uniform(k2, (HIDDEN,), dtype=jnp.float32) - 1.0
    )
    w2 = 0.1 * jax.random.normal(k3, (HIDDEN, N_ACTIONS), dtype=jnp.float32)
    b2 = (1.0 / jnp.sqrt(HIDDEN)) * (
        2.0 * jax.random.uniform(k4, (N_ACTIONS,), dtype=jnp.float32) - 1.0
    )
    return w1, b1, w2, b2


if __name__ == "__main__":
    key = jax.random.PRNGKey(0)
    kx, kp = jax.random.split(key)

    w1, b1, w2, b2 = init_params(kp)
    # One-time packing (once per weight update in a DQN loop): single operand, one DMA.
    w_pack = pack_params(w1, b1, w2, b2)

    def ref_forward(x):
        return jnp.maximum(x @ w1 + b1, 0.0) @ w2 + b2

    ok = True
    # Exercise: batched learn-step (gridless), single-state action selection (pad to 8),
    # and a large batch (gridded / parallel path).
    for B in (32, 1, 300):
        x = jax.random.normal(jax.random.fold_in(kx, B), (B, N_STATES), dtype=jnp.float32)
        out = net_forward(x, w_pack)
        jax.block_until_ready(out)
        ref = ref_forward(x)
        assert out.shape == (B, N_ACTIONS)
        ok = ok and bool(jnp.allclose(out, ref, atol=1e-5, rtol=1e-5))

    assert ok
    print("KERNEL_OK")
</pallas_src>

<mosaic_0001>
module attributes {stable_mosaic.version = 11 : i64} {
  func.func @net_kernel(%arg0: memref<32x2xf32, #tpu.memory_space<vmem>>, %arg1: memref<136x128xf32, #tpu.memory_space<vmem>>, %arg2: memref<32x128xf32, #tpu.memory_space<vmem>>) attributes {dimension_semantics = [], scalar_prefetch = 0 : i64, scratch_operands = 0 : i64, tpu.core_type = #tpu.core_type<tc>} {
    %c0 = arith.constant 0 : index
    %c0_0 = arith.constant 0 : index
    %0 = vector.load %arg0[%c0, %c0_0] : memref<32x2xf32, #tpu.memory_space<vmem>>, vector<32x2xf32>
    %c0_1 = arith.constant 0 : index
    %c0_2 = arith.constant 0 : index
    %1 = vector.load %arg1[%c0_1, %c0_2] : memref<136x128xf32, #tpu.memory_space<vmem>>, vector<1x128xf32>
    %c1 = arith.constant 1 : index
    %c0_3 = arith.constant 0 : index
    %2 = vector.load %arg1[%c1, %c0_3] : memref<136x128xf32, #tpu.memory_space<vmem>>, vector<1x128xf32>
    %c2 = arith.constant 2 : index
    %c0_4 = arith.constant 0 : index
    %3 = vector.load %arg1[%c2, %c0_4] : memref<136x128xf32, #tpu.memory_space<vmem>>, vector<1x128xf32>
    %4 = vector.extract_strided_slice %0 {offsets = [0, 0], sizes = [32, 1], strides = [1, 1]} : vector<32x2xf32> to vector<32x1xf32>
    %5 = vector.broadcast %4 : vector<32x1xf32> to vector<32x128xf32>
    %6 = vector.broadcast %1 : vector<1x128xf32> to vector<32x128xf32>
    %7 = arith.mulf %5, %6 : vector<32x128xf32>
    %8 = vector.broadcast %3 : vector<1x128xf32> to vector<32x128xf32>
    %9 = arith.addf %8, %7 : vector<32x128xf32>
    %10 = vector.extract_strided_slice %0 {offsets = [0, 1], sizes = [32, 1], strides = [1, 1]} : vector<32x2xf32> to vector<32x1xf32>
    %11 = vector.broadcast %10 : vector<32x1xf32> to vector<32x128xf32>
    %12 = vector.broadcast %2 : vector<1x128xf32> to vector<32x128xf32>
    %13 = arith.mulf %11, %12 : vector<32x128xf32>
    %14 = arith.addf %9, %13 : vector<32x128xf32>
    %cst = arith.constant 0.000000e+00 : f32
    %15 = vector.broadcast %cst : f32 to vector<32x128xf32>
    %16 = arith.maximumf %14, %15 : vector<32x128xf32>
    %c8 = arith.constant 8 : index
    %c0_5 = arith.constant 0 : index
    %17 = vector.load %arg1[%c8, %c0_5] : memref<136x128xf32, #tpu.memory_space<vmem>>, vector<128x128xf32>
    %cst_6 = arith.constant dense<0.000000e+00> : vector<32x128xf32>
    %18 = tpu.matmul %16, %17, %cst_6 {dimension_numbers = #tpu.dot_dimension_numbers<[1], [0], [0], [1], [0, 0, 1, 1], [], []>} : vector<32x128xf32>, vector<128x128xf32>, vector<32x128xf32> -> vector<32x128xf32>
    %c0_7 = arith.constant 0 : index
    %c0_8 = arith.constant 0 : index
    %19 = vector.load %arg2[%c0_7, %c0_8] : memref<32x128xf32, #tpu.memory_space<vmem>>, vector<32x128xf32>
    tpu.vector_store %arg2[%c0_7, %c0_8], %18 {strides = array<i32>} : memref<32x128xf32, #tpu.memory_space<vmem>>, vector<32x128xf32>,
    return
  }
}

</mosaic_0001>

<bundles_post_ra>
// kernel: tpu_custom_call.1
= control target key start
LH: loop header
LB: loop body
LE: loop exit
PB: predicated region body
PF: predicated region fallthrough
CT: control target
= control target key end

     0   :  { %7 = vsyncpa [#allocation3], 0  ;;  %s453_s0 = inlined_call_operand.vmem [shape: f32[32,2], index: 0, kind: input, shape index: {}]   ;;  %s454_s1 = inlined_call_operand.hbm [shape: f32[136,128], index: 1, kind: input, shape index: {}]   ;;  %s455_s2 = inlined_call_operand.hbm [shape: f32[32,128], index: 2, kind: output, shape index: {}]  }
   0x1   :  { %8 = vsyncpa [#allocation4], 0  ;;  %s390_s9 = smov [#allocation2]   ;;  %s342_s13 = scalar_lea.hbm %s454_s1, 2176 }
   0x2   :  { %s16_s10 = sshll.u32 %s390_s9, 4  ;;  %p343_p0 = scmp.ne.s32.totalorder %s454_s1, %s342_s13  ;;  %s17_s10 = int_to_ptr.vmem [resolvable:$true] %s16_s10 }
   0x3   :  { %p346_p1 = scmp.lt.u32.totalorder %s342_s13, %s454_s1 }
   0x5   :  { %p348_p2 = pnand %p346_p1, %p343_p0 }
   0x7   :  { %351 = shalt.err (!%p348_p2)
}
   0x8   :  { %s352_s18 = scalar_lea.vmem %s17_s10, 2176  ;;  %p357_p4 = scmp.lt.s32.totalorder %s17_s10, %s17_s10 }
   0x9   :  { %p353_p3 = scmp.ne.s32.totalorder %s17_s10, %s352_s18  ;;  %p358_p5 = scmp.lt.s32.totalorder %s352_s18, %s352_s18 }
   0xb   :  { %p359_p6 = por %p358_p5, %p357_p4 }
   0xd   :  { %p360_p7 = pnand %p359_p6, %p353_p3 }
   0xf   :  { %363 = shalt.err (!%p360_p7)
}
  0x10   :  { %s391_s19 = smov 128   ;;  %s392_s20 = smov 8  }
  0x11   :  { %22 = dma.hbm_to_vmem [thread:$0]  %s454_s1, 2176, %s17_s10, [#allocation3], %s391_s19, %s391_s19, %s392_s20  }
  0x12   :  { %386 = dma.done.wait [#allocation3], 2176  }
  0x13   :  { %387 = vsyncadd [#allocation3], 4294965120  ;;  %v393_v0 = vmov 0   ;;  %v27_v1 = vld [vmem:[%s453_s0 + $0x8] sm:$0xff]  ;;  %v26_v2 = vld [vmem:[%s453_s0] sm:$0xff]  ;;  %v394_v14 = vmov 1  }
  0x14   :  { %339 = vset.pattern.permute.xlu1 %v393_v0  ;;  %338 = vset.pattern.permute.xlu0 %v393_v0  ;;  %v29_v3 = vld [vmem:[%s453_s0 + $0x18] sm:$0xff]  ;;  %v101_v4 = vld [vmem:[#allocation2 + $0x8] sm:$0xff]  ;;  %v102_v5 = vld [vmem:[#allocation2 + $0x10] sm:$0xff] }
  0x15   :  { %40 = vperm.xlu1 %339, %v27_v1   ;;  %35 = vperm.xlu0 %338, %v26_v2   ;;  %v28_v6 = vld [vmem:[%s453_s0 + $0x10] sm:$0xff]  ;;  %v284_v7 = vpack.c.bf16 %v102_v5, %v101_v4  ;;  %v103_v8 = vld [vmem:[#allocation2 + $0x18] sm:$0xff]  ;;  %v104_v9 = vld [vmem:[#allocation2 + $0x20] sm:$0xff]  ;;  %s395_s0 = smov [#allocation5]  }
  0x16   :  { %v288_v10 = vpack.c.bf16 %v104_v9, %v103_v8  ;;  %v105_v11 = vld [vmem:[#allocation2 + $0x28] sm:$0xff]  ;;  %v106_v12 = vld [vmem:[#allocation2 + $0x30] sm:$0xff]  ;;  %v107_v15 = vld [vmem:[#allocation2 + $0x38] sm:$0xff]  ;;  %s211_s30 = sshll.u32 %s395_s0, 4  ;;  %s212_s30 = int_to_ptr.vmem [resolvable:$true] %s211_s30 }
  0x17   :  { %285 = vmatprep.subr.bf16.mxu0 %v284_v7  ;;  %316 = vmatprep.subr.bf16.mxu1 %v284_v7  ;;  %v292_v13 = vpack.c.bf16 %v106_v12, %v105_v11  ;;  %v108_v16 = vld [vmem:[#allocation2 + $0x40] sm:$0xff]  ;;  %v109_v18 = vld [vmem:[#allocation2 + $0x48] sm:$0xff]  ;;  %v110_v19 = vld [vmem:[#allocation2 + $0x50] sm:$0xff]  ;;  %s364_s3 = scalar_lea.vmem %s212_s30, 512  ;;  %p369_p9 = scmp.lt.s32.totalorder %s212_s30, %s212_s30 }
  0x18   :  { %287 = vmatpush3.bf16.msra.mxu0 %v284_v7  ;;  %324 = vmatpush3.bf16.msra.mxu1 %v284_v7  ;;  %v296_v17 = vpack.c.bf16 %v108_v16, %v107_v15  ;;  %v300_v20 = vpack.c.bf16 %v110_v19, %v109_v18  ;;  %v111_v21 = vld [vmem:[#allocation2 + $0x58] sm:$0xff]  ;;  %v112_v22 = vld [vmem:[#allocation2 + $0x60] sm:$0xff]  ;;  %v113_v24 = vld [vmem:[#allocation2 + $0x68] sm:$0xff]  ;;  %p365_p8 = scmp.ne.s32.totalorder %s212_s30, %s364_s3  ;;  %p370_p10 = scmp.lt.s32.totalorder %s364_s3, %s364_s3 }
  0x19   :  { %50 = vperm.xlu1 %339, %v29_v3   ;;  %45 = vperm.xlu0 %338, %v28_v6   ;;  %v304_v23 = vpack.c.bf16 %v112_v22, %v111_v21  ;;  %v114_v25 = vld [vmem:[#allocation2 + $0x70] sm:$0xff]  ;;  %v115_v27 = vld [vmem:[#allocation2 + $0x78] sm:$0xff]  ;;  %v116_v28 = vld [vmem:[#allocation2 + $0x80] sm:$0xff] }
  0x1a   :  { %289 = vmatprep.subr.bf16.mxu0 %v288_v10  ;;  %317 = vmatprep.subr.bf16.mxu1 %v288_v10  ;;  %v308_v26 = vpack.c.bf16 %v114_v25, %v113_v24  ;;  %v312_v29 = vpack.c.bf16 %v116_v28, %v115_v27  ;;  %v223_v32 = vld [vmem:[#allocation2] ss:$0 sm:$0xff]  ;;  %v224_v37 = vld [vmem:[#allocation2 + $0x2] ss:$0 sm:$0xff]  ;;  %v225_v38 = vld [vmem:[#allocation2 + $0x1] ss:$0 sm:$0xff]  ;;  %p371_p11 = por %p370_p10, %p369_p9 }
  0x1c   :  { %291 = vmatpush3.bf16.msra.mxu0 %v288_v10  ;;  %325 = vmatpush3.bf16.msra.mxu1 %v288_v10  ;;  %p372_p12 = pnand %p371_p11, %p365_p8 }
  0x1d   :  { %341 = vset.pattern.permute.xlu1 %v394_v14  ;;  %340 = vset.pattern.permute.xlu0 %v394_v14 }
  0x1e   :  { %78 = vperm.xlu1 %341, %v28_v6   ;;  %70 = vperm.xlu0 %340, %v26_v2  }
  0x1f   :  { %293 = vmatprep.subr.bf16.mxu0 %v292_v13  ;;  %318 = vmatprep.subr.bf16.mxu1 %v292_v13 }
  0x20   :  { %295 = vmatpush3.bf16.msra.mxu0 %v292_v13  ;;  %326 = vmatpush3.bf16.msra.mxu1 %v292_v13 }
  0x21   :  { %297 = vmatprep.subr.bf16.mxu0 %v296_v17  ;;  %319 = vmatprep.subr.bf16.mxu1 %v296_v17 }
  0x22   :  { %74 = vperm.xlu1 %341, %v27_v1   ;;  %82 = vperm.xlu0 %340, %v29_v3  }
  0x24   :  { %299 = vmatpush3.bf16.msra.mxu0 %v296_v17  ;;  %327 = vmatpush3.bf16.msra.mxu1 %v296_v17 }
  0x25   :  { %301 = vmatprep.subr.bf16.mxu0 %v300_v20  ;;  %320 = vmatprep.subr.bf16.mxu1 %v300_v20 }
  0x28   :  { %303 = vmatpush3.bf16.msra.mxu0 %v300_v20  ;;  %328 = vmatpush3.bf16.msra.mxu1 %v300_v20 }
  0x29   :  { %305 = vmatprep.subr.bf16.mxu0 %v304_v23  ;;  %321 = vmatprep.subr.bf16.mxu1 %v304_v23 }
  0x2c   :  { %307 = vmatpush3.bf16.msra.mxu0 %v304_v23  ;;  %329 = vmatpush3.bf16.msra.mxu1 %v304_v23 }
  0x2d   :  { %309 = vmatprep.subr.bf16.mxu0 %v308_v26  ;;  %322 = vmatprep.subr.bf16.mxu1 %v308_v26 }
  0x30   :  { %311 = vmatpush3.bf16.msra.mxu0 %v308_v26  ;;  %330 = vmatpush3.bf16.msra.mxu1 %v308_v26 }
  0x31   :  { %313 = vmatprep.subr.bf16.mxu0 %v312_v29  ;;  %323 = vmatprep.subr.bf16.mxu1 %v312_v29 }
  0x34   :  { %315 = vmatpush3.bf16.msra.mxu0 %v312_v29  ;;  %331 = vmatpush3.bf16.msra.mxu1 %v312_v29 }
  0x94   :  { %v41_v30 = vpop.permute.xlu1 %40  ;;  %v36_v31 = vpop.permute.xlu0 %35 }
  0x95   :  { %v57_v35 = vmul.f32 %v223_v32, %v36_v31  ;;  %v58_v39 = vmul.f32 %v223_v32, %v41_v30 }
  0x97   :  { %v65_v45 = vadd.f32 %v224_v37, %v57_v35  ;;  %v66_v49 = vadd.f32 %v224_v37, %v58_v39 }
  0x98   :  { %v51_v33 = vpop.permute.xlu1 %50  ;;  %v46_v34 = vpop.permute.xlu0 %45 }
  0x99   :  { %v59_v36 = vmul.f32 %v223_v32, %v46_v34  ;;  %v60_v40 = vmul.f32 %v223_v32, %v51_v33 }
  0x9b   :  { %v67_v46 = vadd.f32 %v224_v37, %v59_v36  ;;  %v68_v50 = vadd.f32 %v224_v37, %v60_v40 }
  0x9d   :  { %v79_v41 = vpop.permute.xlu1 %78  ;;  %v71_v42 = vpop.permute.xlu0 %70 }
  0x9e   :  { %v91_v43 = vmul.f32 %v225_v38, %v79_v41  ;;  %v89_v44 = vmul.f32 %v225_v38, %v71_v42 }
  0xa0   :  { %v93_v47 = vadd.f32 %v89_v44, %v65_v45  ;;  %v95_v48 = vadd.f32 %v91_v43, %v67_v46 }
  0xa1   :  { %v75_v51 = vpop.permute.xlu1 %74  ;;  %v83_v52 = vpop.permute.xlu0 %82 }
  0xa2   :  { %v90_v53 = vmul.f32 %v225_v38, %v75_v51  ;;  %v92_v54 = vmul.f32 %v225_v38, %v83_v52  ;;  %v97_v55 = vmax.f32 %v93_v47, 0.0  ;;  %v99_v56 = vmax.f32 %v95_v48, 0.0 }
  0xa4   :  { %v94_v57 = vadd.f32 %v90_v53, %v66_v49  ;;  %v96_v58 = vadd.f32 %v92_v54, %v68_v50  ;;  %278 = vmatprep.mubr.f32.mxu0 %v97_v55  ;;  %281 = vmatprep.mubr.f32.mxu1 %v99_v56 }
  0xa6   :  { %v98_v59 = vmax.f32 %v94_v57, 0.0  ;;  %v100_v60 = vmax.f32 %v96_v58, 0.0 }
  0xa8   :  { %279 = vmatmul.mubr.f32.vlgmr.msra.gmra.mrb[0].mxu0 %v98_v59  ;;  %282 = vmatmul.mubr.f32.vlgmr.msra.gmra.mrb[0].mxu1 %v100_v60 }
 0x17b   :  { %v280_v61 = vpop.f32.mrb[0].mxu0  ;;  %v283_v62 = vpop.f32.mrb[0].mxu1 }
 0x17c   :  { %203 = vst [vmem:[#allocation5 + $0x8] sm:$0xff] %v280_v61  ;;  %205 = vst [vmem:[#allocation5 + $0x18] sm:$0xff] %v283_v62  ;;  %v183_v63 = vpop.f32.mrb[1].mxu0  ;;  %v193_v0 = vpop.f32.mrb[1].mxu1 }
 0x17d   :  { %202 = vst [vmem:[#allocation5] sm:$0xff] %v183_v63  ;;  %204 = vst [vmem:[#allocation5 + $0x10] sm:$0xff] %v193_v0 }
 0x17e   :  { %375 = shalt.err (!%p372_p12)
}
 0x17f   :  { %s376_s6 = scalar_lea.hbm %s455_s2, 512 }
 0x180   :  { %p377_p13 = scmp.ne.s32.totalorder %s455_s2, %s376_s6  ;;  %p380_p0 = scmp.lt.u32.totalorder %s376_s6, %s455_s2 }
 0x182   :  { %p382_p1 = pnand %p380_p0, %p377_p13 }
 0x184   :  { %385 = shalt.err (!%p382_p1)
}
 0x185   :  { %217 = dma.vmem_to_hbm [thread:$0]  %s212_s30, 512, %s455_s2, [#allocation4], %s391_s19, %s391_s19, %s392_s20  }
 0x186   :  { %388 = dma.done.wait [#allocation4], 512  }
 0x187   :  { %389 = vsyncadd [#allocation4], 4294966784 }
 0x188   :  { %221 = vsyncpa [#allocation3], 1 }
 0x189   :  { %222 = vsyncpa [#allocation4], 1 }

</bundles_post_ra>
